<compile_context>
chip_gen: v7x
topology: tpu7x:2x2x1
jax: 0.10.0
libtpu: 0.0.40
codegen_flags: <defaults>
</compile_context>

<pallas_src>
import jax
import jax.numpy as jnp
from jax.experimental import pallas as pl
from jax.experimental.pallas import tpu as pltpu


def _cost_kernel(q_ref, r_ref, Q_ref, R_ref):
    # q_ref: (1, nx) f32, r_ref: (1, nu) f32 (full-array VMEM blocks).
    q_sp = jax.nn.softplus(q_ref[...])  # (1, nx), VPU/EUP, stays f32
    r_sp = jax.nn.softplus(r_ref[...])  # (1, nu)

    nx = Q_ref.shape[0]
    nu = R_ref.shape[0]

    # Q[i, j] = softplus(q)[j] iff i == j, else 0.  The (1, nx) row broadcasts
    # along the sublane (row) axis inside the where.
    row_q = jax.lax.broadcasted_iota(jnp.int32, (nx, nx), 0)
    col_q = jax.lax.broadcasted_iota(jnp.int32, (nx, nx), 1)
    Q_ref[...] = jnp.where(row_q == col_q, q_sp, 0.0)

    row_r = jax.lax.broadcasted_iota(jnp.int32, (nu, nu), 0)
    col_r = jax.lax.broadcasted_iota(jnp.int32, (nu, nu), 1)
    R_ref[...] = jnp.where(row_r == col_r, r_sp, 0.0)


def cost_model_forward(q_diag_params: jax.Array, r_diag_params: jax.Array):
    """Pallas equivalent of CostModel.forward().

    Args:
      q_diag_params: (nx,) float32
      r_diag_params: (nu,) float32
    Returns:
      (Q, R): ((nx, nx), (nu, nu)) float32 diagonal cost matrices.
    """
    nx = q_diag_params.shape[0]
    nu = r_diag_params.shape[0]

    # Free metadata reshapes to lane-major 2-D rows; no packing buffer, no
    # extra HBM round trip.
    q2 = q_diag_params.astype(jnp.float32).reshape(1, nx)
    r2 = r_diag_params.astype(jnp.float32).reshape(1, nu)

    Q, R = pl.pallas_call(
        _cost_kernel,
        out_shape=(
            jax.ShapeDtypeStruct((nx, nx), jnp.float32),
            jax.ShapeDtypeStruct((nu, nu), jnp.float32),
        ),
        in_specs=[
            pl.BlockSpec(memory_space=pltpu.VMEM),
            pl.BlockSpec(memory_space=pltpu.VMEM),
        ],
        out_specs=(
            pl.BlockSpec(memory_space=pltpu.VMEM),
            pl.BlockSpec(memory_space=pltpu.VMEM),
        ),
    )(q2, r2)
    return Q, R


if __name__ == "__main__":
    nx, nu = 4, 1

    # Deterministic parameter init mirroring the module's __init__, with a
    # small deterministic perturbation from PRNGKey(0).
    key = jax.random.PRNGKey(0)
    kq, kr = jax.random.split(key)
    q_init = jnp.array([2.3, 0.0, 4.6, 0.0], dtype=jnp.float32)
    r_init = jnp.array([-2.3], dtype=jnp.float32)
    q_params = q_init + 0.01 * jax.random.normal(kq, (nx,), dtype=jnp.float32)
    r_params = r_init + 0.01 * jax.random.normal(kr, (nu,), dtype=jnp.float32)

    Q, R = jax.jit(cost_model_forward)(q_params, r_params)
    Q, R = jax.block_until_ready((Q, R))

    # Reference check against plain JAX (same semantics as the torch module).
    Q_ref = jnp.diag(jax.nn.softplus(q_params))
    R_ref = jnp.diag(jax.nn.softplus(r_params))
    assert Q.shape == (nx, nx) and R.shape == (nu, nu)
    assert jnp.allclose(Q, Q_ref, atol=1e-5), "Q mismatch"
    assert jnp.allclose(R, R_ref, atol=1e-5), "R mismatch"

    print("KERNEL_OK")
</pallas_src>

<mosaic_0001>
module attributes {stable_mosaic.version = 11 : i64} {
  func.func @_cost_kernel(%arg0: memref<1x4xf32, #tpu.memory_space<vmem>>, %arg1: memref<1x1xf32, #tpu.memory_space<vmem>>, %arg2: memref<4x4xf32, #tpu.memory_space<vmem>>, %arg3: memref<1x1xf32, #tpu.memory_space<vmem>>) attributes {dimension_semantics = [], scalar_prefetch = 0 : i64, scratch_operands = 0 : i64, tpu.core_type = #tpu.core_type<tc>} {
    %c0 = arith.constant 0 : index
    %c0_0 = arith.constant 0 : index
    %0 = vector.load %arg0[%c0, %c0_0] : memref<1x4xf32, #tpu.memory_space<vmem>>, vector<1x4xf32>
    %cst = arith.constant 0.000000e+00 : f32
    %1 = vector.broadcast %cst : f32 to vector<1x4xf32>
    %2 = arith.maximumf %0, %1 : vector<1x4xf32>
    %3 = vector.broadcast %cst : f32 to vector<1x4xf32>
    %4 = arith.subf %0, %3 : vector<1x4xf32>
    %5 = arith.cmpf one, %4, %4 : vector<1x4xf32>
    %6 = vector.broadcast %cst : f32 to vector<1x4xf32>
    %7 = arith.addf %0, %6 : vector<1x4xf32>
    %8 = math.absf %4 : vector<1x4xf32>
    %cst_1 = arith.constant 0.000000e+00 : f32
    %9 = vector.broadcast %cst_1 : f32 to vector<1x4xf32>
    %10 = arith.subf %9, %8 : vector<1x4xf32>
    %11 = math.exp %10 : vector<1x4xf32>
    %12 = math.log1p %11 : vector<1x4xf32>
    %13 = arith.addf %2, %12 : vector<1x4xf32>
    %14 = arith.select %5, %7, %13 : vector<1x4xi1>, vector<1x4xf32>
    %c0_2 = arith.constant 0 : index
    %c0_3 = arith.constant 0 : index
    %15 = vector.load %arg1[%c0_2, %c0_3] : memref<1x1xf32, #tpu.memory_space<vmem>>, vector<1x1xf32>
    %cst_4 = arith.constant 0.000000e+00 : f32
    %16 = vector.broadcast %cst_4 : f32 to vector<1x1xf32>
    %17 = arith.maximumf %15, %16 : vector<1x1xf32>
    %18 = vector.broadcast %cst_4 : f32 to vector<1x1xf32>
    %19 = arith.subf %15, %18 : vector<1x1xf32>
    %20 = arith.cmpf one, %19, %19 : vector<1x1xf32>
    %21 = vector.broadcast %cst_4 : f32 to vector<1x1xf32>
    %22 = arith.addf %15, %21 : vector<1x1xf32>
    %23 = math.absf %19 : vector<1x1xf32>
    %cst_5 = arith.constant 0.000000e+00 : f32
    %24 = vector.broadcast %cst_5 : f32 to vector<1x1xf32>
    %25 = arith.subf %24, %23 : vector<1x1xf32>
    %26 = math.exp %25 : vector<1x1xf32>
    %27 = math.log1p %26 : vector<1x1xf32>
    %28 = arith.addf %17, %27 : vector<1x1xf32>
    %29 = arith.select %20, %22, %28 : vector<1x1xi1>, vector<1x1xf32>
    %30 = tpu.iota {dimensions = array<i32: 0>} : vector<4x4xi32>
    %31 = tpu.iota {dimensions = array<i32: 1>} : vector<4x4xi32>
    %32 = arith.cmpi eq, %30, %31 : vector<4x4xi32>
    %cst_6 = arith.constant 0.000000e+00 : f32
    %33 = vector.shape_cast %14 : vector<1x4xf32> to vector<1x4xf32>
    %34 = vector.broadcast %33 : vector<1x4xf32> to vector<4x4xf32>
    %35 = vector.broadcast %cst_6 : f32 to vector<4x4xf32>
    %36 = arith.select %32, %34, %35 : vector<4x4xi1>, vector<4x4xf32>
    %c0_7 = arith.constant 0 : index
    %c0_8 = arith.constant 0 : index
    %37 = vector.load %arg2[%c0_7, %c0_8] : memref<4x4xf32, #tpu.memory_space<vmem>>, vector<4x4xf32>
    tpu.vector_store %arg2[%c0_7, %c0_8], %36 {strides = array<i32>} : memref<4x4xf32, #tpu.memory_space<vmem>>, vector<4x4xf32>,
    %38 = tpu.iota {dimensions = array<i32: 0>} : vector<1x1xi32>
    %39 = tpu.iota {dimensions = array<i32: 1>} : vector<1x1xi32>
    %40 = arith.cmpi eq, %38, %39 : vector<1x1xi32>
    %cst_9 = arith.constant 0.000000e+00 : f32
    %41 = vector.broadcast %cst_9 : f32 to vector<1x1xf32>
    %42 = arith.select %40, %29, %41 : vector<1x1xi1>, vector<1x1xf32>
    %c0_10 = arith.constant 0 : index
    %c0_11 = arith.constant 0 : index
    %43 = vector.load %arg3[%c0_10, %c0_11] : memref<1x1xf32, #tpu.memory_space<vmem>>, vector<1x1xf32>
    tpu.vector_store %arg3[%c0_10, %c0_11], %42 {strides = array<i32>} : memref<1x1xf32, #tpu.memory_space<vmem>>, vector<1x1xf32>,
    return
  }
}

</mosaic_0001>

<bundles_post_ra>
// kernel: cost_model_forward.1
= control target key start
LH: loop header
LB: loop body
LE: loop exit
PB: predicated region body
PF: predicated region fallthrough
CT: control target
= control target key end

     0   :  { %s217_s0 = inlined_call_operand.vmem [shape: f32[1,4], index: 0, kind: input, shape index: {}]   ;;  %s218_s1 = inlined_call_operand.<no memory space> [shape: f32[1,1], index: 1, kind: input, shape index: {}]   ;;  %s219_s2 = inlined_call_operand.hbm [shape: f32[4,4], index: 2, kind: output, shape index: {0}]   ;;  %s220_s3 = inlined_call_operand.hbm [shape: f32[1,1], index: 3, kind: output, shape index: {1}]  }
   0x1   :  { %v9_v0 = vstv %s218_s1 }
   0x2   :  { %10 = vst [vmem:[#allocation2] sm:$0x1] %v9_v0 }
   0x3   :  { %11 = vsyncpa [#allocation4], 0  ;;  %v17_v1 = vld [vmem:[%s217_s0] sm:$0x1] }
   0x4   :  { %v21_v3 = vand.u32 2147483647, %v17_v1 }
   0x6   :  { %v22_v5 = vsub.f32 0.0, %v21_v3 }
   0x9   :  { %v36_v2 = vld [vmem:[#allocation2] sm:$0x1] }
   0xa   :  { %v40_v4 = vand.u32 2147483647, %v36_v2 }
   0xb   :  { %12 = vsyncpa [#allocation6], 0  ;;  %v23_v7 = vmul.f32 1.442695, %v22_v5  ;;  %v55_v16 = vlaneseq  ;;  %v18_v23 = vmax.f32 %v17_v1, 0.0  ;;  %v37_v24 = vmax.f32 %v36_v2, 0.0 }
   0xc   :  { %v41_v6 = vsub.f32 0.0, %v40_v4  ;;  %vm19_vm2 = vcmp.ne.f32.partialorder %v17_v1, %v17_v1  ;;  %vm38_vm3 = vcmp.ne.f32.partialorder %v36_v2, %v36_v2  ;;  %s158_s0 = smov [#allocation5]   ;;  %s159_s16 = smov [#allocation3]   ;;  %vm70_vm5 = vcmask 0  }
   0xd   :  { %102 = vpow2.f32 %v23_v7  ;;  %v56_v21 = vshrl.u32 %v55_v16, 7  ;;  %v58_v28 = vand.u32 127, %v55_v16  ;;  %s88_s1 = sshll.u32 %s158_s0, 4  ;;  %s78_s17 = sshll.u32 %s159_s16, 4  ;;  %vm67_vm6 = vcmask 27648   ;;  %s89_s1 = int_to_ptr.vmem [resolvable:$true] %s88_s1  ;;  %s186_s17 = int_to_ptr.vmem [resolvable:$true] %s78_s17 }
   0xe   :  { %v42_v8 = vmul.f32 1.442695, %v41_v6  ;;  %s110_s18 = scalar_lea.vmem %s89_s1, 16  ;;  %s114_s19 = scalar_lea.vmem %s89_s1, 32 }
   0xf   :  { %v63_v31 = vsub.s32 0, %v56_v21  ;;  %vm59_vm4 = vcmp.eq.s32.totalorder %v56_v21, %v58_v28  ;;  %p111_p0 = scmp.ne.s32.totalorder %s89_s1, %s110_s18  ;;  %p115_p1 = scmp.lt.s32.totalorder %s89_s1, %s89_s1 }
  0x10   :  { %104 = vpow2.f32 %v42_v8  ;;  %p116_p2 = scmp.lt.s32.totalorder %s114_s19, %s110_s18 }
  0x12   :  { %p117_p3 = por %p116_p2, %p115_p1 }
  0x14   :  { %p118_p4 = pnand %p117_p3, %p111_p0 }
  0x17   :  { %v103_v9 = vpop.eup %102 }
  0x18   :  { %v25_v11 = vadd.f32 1.0, %v103_v9  ;;  %v28_v13 = vmul.f32 -0.5, %v103_v9  ;;  %v31_v17 = vand.u32 2147483647, %v103_v9 }
  0x1a   :  { %v105_v10 = vpop.eup %104  ;;  %106 = vlog2.f32 %v25_v11  ;;  %v29_v15 = vadd.f32 1.0, %v28_v13  ;;  %vm32_vm0 = vcmp.lt.f32.partialorder %v31_v17, 0.0004427343 }
  0x1b   :  { %v44_v12 = vadd.f32 1.0, %v105_v10  ;;  %v47_v14 = vmul.f32 -0.5, %v105_v10  ;;  %v50_v19 = vand.u32 2147483647, %v105_v10 }
  0x1c   :  { %v30_v20 = vmul.f32 %v103_v9, %v29_v15 }
  0x1d   :  { %108 = vlog2.f32 %v44_v12  ;;  %v48_v18 = vadd.f32 1.0, %v47_v14  ;;  %vm51_vm1 = vcmp.lt.f32.partialorder %v50_v19, 0.0004427343 }
  0x1f   :  { %v49_v25 = vmul.f32 %v105_v10, %v48_v18 }
  0x24   :  { %v107_v22 = vpop.eup %106 }
  0x25   :  { %v27_v27 = vmul.f32 0.6931472, %v107_v22 }
  0x27   :  { %v109_v26 = vpop.eup %108  ;;  %v33_v30 = vsel %vm32_vm0, %v30_v20, %v27_v27 }
  0x28   :  { %v46_v29 = vmul.f32 0.6931472, %v109_v26  ;;  %v34_v32 = vadd.f32 %v33_v30, %v18_v23 }
  0x2a   :  { %v52_v33 = vsel %vm51_vm1, %v49_v25, %v46_v29  ;;  %v35_v35 = vsel %vm19_vm2, %v17_v1, %v34_v32 }
  0x2b   :  { %v53_v34 = vadd.f32 %v52_v33, %v37_v24  ;;  %v64_v36 = vrot.slane %v35_v35, %v63_v31 }
  0x2d   :  { %v54_v37 = vsel %vm38_vm3, %v36_v2, %v53_v34  ;;  %v66_v39 = vsel %vm59_vm4, %v64_v36, 0.0 }
  0x2e   :  { %v69_v38 = vsel %vm59_vm4, %v54_v37, 0.0  ;;  %68 = vst.msk [vmem:[#allocation3] sm:$0xf] %vm67_vm6, %v66_v39 }
  0x2f   :  { %71 = vst.msk [vmem:[#allocation5] sm:$0x1] %vm70_vm5, %v69_v38 }
  0x30   :  { %121 = shalt.err (!%p118_p4)
}
  0x31   :  { %s122_s22 = scalar_lea.hbm %s220_s3, 16 }
  0x32   :  { %p123_p5 = scmp.ne.s32.totalorder %s220_s3, %s122_s22  ;;  %p126_p6 = scmp.lt.u32.totalorder %s122_s22, %s220_s3 }
  0x34   :  { %p128_p7 = pnand %p126_p6, %p123_p5 }
  0x36   :  { %131 = shalt.err (!%p128_p7)
}
  0x37   :  { %91 = dma.vmem_to_hbm [thread:$0]  %s89_s1, 16, %s220_s3, [#allocation6]  }
  0x38   :  { %s132_s29 = scalar_lea.vmem %s186_s17, 64  ;;  %p137_p9 = scmp.lt.s32.totalorder %s186_s17, %s186_s17 }
  0x39   :  { %p133_p8 = scmp.ne.s32.totalorder %s186_s17, %s132_s29  ;;  %p138_p10 = scmp.lt.s32.totalorder %s132_s29, %s132_s29 }
  0x3b   :  { %p139_p11 = por %p138_p10, %p137_p9 }
  0x3d   :  { %p140_p12 = pnand %p139_p11, %p133_p8 }
  0x3f   :  { %143 = shalt.err (!%p140_p12)
}
  0x40   :  { %s144_s5 = scalar_lea.hbm %s219_s2, 64 }
  0x41   :  { %p145_p13 = scmp.ne.s32.totalorder %s219_s2, %s144_s5  ;;  %p148_p0 = scmp.lt.u32.totalorder %s144_s5, %s219_s2 }
  0x43   :  { %p150_p1 = pnand %p148_p0, %p145_p13 }
  0x45   :  { %153 = shalt.err (!%p150_p1)
}
  0x46   :  { %81 = dma.vmem_to_hbm [thread:$0]  %s186_s17, 64, %s219_s2, [#allocation4]  }
  0x47   :  { %154 = dma.done.wait [#allocation4], 64  }
  0x48   :  { %155 = vsyncadd [#allocation4], 4294967232 }
  0x49   :  { %156 = dma.done.wait [#allocation6], 16  }
  0x4a   :  { %157 = vsyncadd [#allocation6], 4294967280 }
  0x4b   :  { %98 = vsyncpa [#allocation4], 1 }
  0x4c   :  { %99 = vsyncpa [#allocation6], 1 }

</bundles_post_ra>
